<compile_context>
chip_gen: v7x
topology: tpu7x:2x2x1
jax: 0.10.0
libtpu: 0.0.40
codegen_flags: <defaults>
</compile_context>

<pallas_src>
import jax
import jax.numpy as jnp
from jax.experimental import pallas as pl
from jax.experimental.pallas import tpu as pltpu


INPUT_DIM = 11
LATENT_DIM = 5
HIDDEN = 64

# Padded / fused dims (lane layout inside the kernel).
IN_PAD = 16        # x features 11 -> 16 (padded in-kernel)
LAT_PAD = 8        # latent 5 -> 8 (padded in-kernel)
ML_PAD = 16        # fused mean(0:5) | logvar(8:13) output lanes
DT_PAD = 128       # fused h_dec(0:64) | h_trans(64:128)
FIN_PAD = 32       # fused x_hat(0:11) | psi_arr(16:27) | psi_sc(27:29)
OUT_LANES = FIN_PAD + ML_PAD   # 48-lane output slab: [fin | ml]
PARAM_LANES = 128              # packed parameter buffer lane width

# Packed parameter buffer row offsets (all 8-sublane aligned).
R_W1, R_B1 = 0, 16        # W1 [16,64],  b1 at row 16
R_W2, R_B2 = 24, 88       # W2 [64,16],  b2 at row 88
R_W3, R_B3 = 96, 104      # W3 [8,128],  b3 at row 104
R_W4, R_B4 = 112, 240     # W4 [128,32], b4 at row 240
PARAM_ROWS = 248

# Output-slab column map (wrapper-side slicing).
COL_XHAT = 0                      # 0:11   (within fin)
COL_PSI_ARR = 16                  # 16:27  (within fin)
COL_PSI_SC = 27                   # 27:29  (within fin)
COL_MEAN = FIN_PAD + 0            # 32:37  (within ml)
COL_LOGVAR = FIN_PAD + LAT_PAD    # 40:45  (within ml)


def _round_up(n, m):
    return ((n + m - 1) // m) * m


def _cdiv(a, b):
    return -(-a // b)


def vae_kernel(x_ref, eps_ref, p_ref, out_ref):
    tb = x_ref.shape[0]
    x = x_ref[...]        # [TB, 11]
    eps = eps_ref[...]    # [TB, 5]

    # Pad feature/latent lanes in-register (cheap lane select) instead of
    # materializing padded copies host-side (extra HBM reads+writes).
    x16 = jnp.concatenate(
        [x, jnp.zeros((tb, IN_PAD - INPUT_DIM), jnp.float32)], axis=-1)    # [TB, 16]
    eps8 = jnp.concatenate(
        [eps, jnp.zeros((tb, LAT_PAD - LATENT_DIM), jnp.float32)], axis=-1)  # [TB, 8]

    # Static slices into the single packed parameter buffer (all starts 8-row aligned).
    w1 = p_ref[R_W1:R_W1 + IN_PAD, 0:HIDDEN]     # [16, 64]
    b1 = p_ref[R_B1:R_B1 + 1, 0:HIDDEN]          # [1, 64]
    w2 = p_ref[R_W2:R_W2 + HIDDEN, 0:ML_PAD]     # [64, 16]
    b2 = p_ref[R_B2:R_B2 + 1, 0:ML_PAD]          # [1, 16]
    w3 = p_ref[R_W3:R_W3 + LAT_PAD, 0:DT_PAD]    # [8, 128]
    b3 = p_ref[R_B3:R_B3 + 1, 0:DT_PAD]          # [1, 128]
    w4 = p_ref[R_W4:R_W4 + DT_PAD, 0:FIN_PAD]    # [128, 32]
    b4 = p_ref[R_B4:R_B4 + 1, 0:FIN_PAD]         # [1, 32]

    # 1) Encoder fc1 + ReLU.
    h_e = jnp.maximum(
        jnp.dot(x16, w1, preferred_element_type=jnp.float32) + b1, 0.0)

    # 2) Fused mean || logvar.
    ml = jnp.dot(h_e, w2, preferred_element_type=jnp.float32) + b2   # [TB, 16]
    mean_p = ml[:, 0:LAT_PAD]            # mean in lanes 0:5, zeros in 5:8
    logvar_p = ml[:, LAT_PAD:ML_PAD]     # logvar in lanes 0:5, zeros in 5:8

    # Reparameterize: z = mean + eps * exp(0.5 * logvar).
    # Padding lanes: mean=0, logvar=0, eps=0  ->  z=0 (and W3 pad rows are zero anyway).
    z_p = mean_p + eps8 * jnp.exp(0.5 * logvar_p)                    # [TB, 8]

    # 3) Fused decoder fc1 || translator fc1 + ReLU.
    h_dt = jnp.maximum(
        jnp.dot(z_p, w3, preferred_element_type=jnp.float32) + b3, 0.0)  # [TB, 128]

    # 4) Fused block-diagonal decoder fc2 || translator fc3 || translator fc2.
    fin = jnp.dot(h_dt, w4, preferred_element_type=jnp.float32) + b4     # [TB, 32]

    # Two direct sub-slice stores cover all 48 output lanes (no concat temp).
    out_ref[:, 0:FIN_PAD] = fin                 # x_hat | psi_arr | psi_sc
    out_ref[:, FIN_PAD:OUT_LANES] = ml          # mean | logvar


def pack_params(p):
    """Pack the 16 weight/bias arrays into one (8,128)-aligned f32 buffer [248, 128]."""
    f32 = jnp.float32

    w1 = jnp.zeros((IN_PAD, HIDDEN), f32).at[:INPUT_DIM, :].set(p["we1"])
    b1 = p["be1"].reshape(1, HIDDEN).astype(f32)

    w2 = (jnp.zeros((HIDDEN, ML_PAD), f32)
          .at[:, 0:LATENT_DIM].set(p["wem"])
          .at[:, LAT_PAD:LAT_PAD + LATENT_DIM].set(p["wel"]))
    b2 = (jnp.zeros((1, ML_PAD), f32)
          .at[:, 0:LATENT_DIM].set(p["bem"].reshape(1, LATENT_DIM))
          .at[:, LAT_PAD:LAT_PAD + LATENT_DIM].set(p["bel"].reshape(1, LATENT_DIM)))

    w3 = (jnp.zeros((LAT_PAD, DT_PAD), f32)
          .at[0:LATENT_DIM, 0:HIDDEN].set(p["wd1"])
          .at[0:LATENT_DIM, HIDDEN:DT_PAD].set(p["wt1"]))
    b3 = (jnp.zeros((1, DT_PAD), f32)
          .at[:, 0:HIDDEN].set(p["bd1"].reshape(1, HIDDEN))
          .at[:, HIDDEN:DT_PAD].set(p["bt1"].reshape(1, HIDDEN)))

    w4 = (jnp.zeros((DT_PAD, FIN_PAD), f32)
          .at[0:HIDDEN, COL_XHAT:COL_XHAT + INPUT_DIM].set(p["wd2"])
          .at[HIDDEN:DT_PAD, COL_PSI_ARR:COL_PSI_ARR + INPUT_DIM].set(p["wt3"])
          .at[HIDDEN:DT_PAD, COL_PSI_SC:COL_PSI_SC + 2].set(p["wt2"]))
    b4 = (jnp.zeros((1, FIN_PAD), f32)
          .at[:, COL_XHAT:COL_XHAT + INPUT_DIM].set(p["bd2"].reshape(1, INPUT_DIM))
          .at[:, COL_PSI_ARR:COL_PSI_ARR + INPUT_DIM].set(p["bt3"].reshape(1, INPUT_DIM))
          .at[:, COL_PSI_SC:COL_PSI_SC + 2].set(p["bt2"].reshape(1, 2)))

    buf = jnp.zeros((PARAM_ROWS, PARAM_LANES), f32)
    buf = buf.at[R_W1:R_W1 + IN_PAD, 0:HIDDEN].set(w1)
    buf = buf.at[R_B1:R_B1 + 1, 0:HIDDEN].set(b1)
    buf = buf.at[R_W2:R_W2 + HIDDEN, 0:ML_PAD].set(w2)
    buf = buf.at[R_B2:R_B2 + 1, 0:ML_PAD].set(b2)
    buf = buf.at[R_W3:R_W3 + LAT_PAD, 0:DT_PAD].set(w3)
    buf = buf.at[R_B3:R_B3 + 1, 0:DT_PAD].set(b3)
    buf = buf.at[R_W4:R_W4 + DT_PAD, 0:FIN_PAD].set(w4)
    buf = buf.at[R_B4:R_B4 + 1, 0:FIN_PAD].set(b4)
    return buf


def _choose_tile(B, *, block_b_max=2048, small_batch=64, min_steps=2):
    """Batch tile heuristic.

    Tiny batches: one grid step (per-step overhead not worth splitting).
    Larger batches: at least `min_steps` grid steps so v7x's 2 TensorCores both
    get work via the "parallel" grid axis, with the tile capped at `block_b_max`
    rows (~a few MiB of VMEM incl. double buffers -> safe on v5e/v6e/v7x).
    """
    if B <= small_batch:
        return _round_up(B, 8)
    steps = max(min_steps, _cdiv(B, block_b_max))
    return _round_up(_cdiv(B, steps), 8)


def vae_forward(x, eps, packed_params, *, block_b_max=2048):
    """x: [B, 11] f32, eps: [B, 5] f32, packed_params: [248, 128] f32."""
    B = x.shape[0]
    tb = _choose_tile(B, block_b_max=block_b_max)
    b_pad = _round_up(B, tb)

    x = x.astype(jnp.float32)
    eps = eps.astype(jnp.float32)
    # Only the batch dim is (possibly) padded host-side; lane padding happens
    # in-kernel so no extra HBM traffic for the feature dims.
    if b_pad != B:
        x = jnp.pad(x, ((0, b_pad - B), (0, 0)))
        eps = jnp.pad(eps, ((0, b_pad - B), (0, 0)))

    grid = (b_pad // tb,)
    slab = pl.pallas_call(
        vae_kernel,
        grid=grid,
        in_specs=[
            # Block last dims equal the full array dims -> (8,128) rule satisfied.
            pl.BlockSpec((tb, INPUT_DIM), lambda i: (i, 0)),
            pl.BlockSpec((tb, LATENT_DIM), lambda i: (i, 0)),
            # Constant block index: Pallas does not re-DMA a block whose index
            # is unchanged across grid steps, so the 127 KiB param buffer is
            # fetched once per launch.
            pl.BlockSpec((PARAM_ROWS, PARAM_LANES), lambda i: (0, 0)),
        ],
        out_specs=pl.BlockSpec((tb, OUT_LANES), lambda i: (i, 0)),
        out_shape=jax.ShapeDtypeStruct((b_pad, OUT_LANES), jnp.float32),
        compiler_params=pltpu.CompilerParams(
            dimension_semantics=("parallel",)),
    )(x, eps, packed_params)

    x_hat = slab[:B, COL_XHAT:COL_XHAT + INPUT_DIM]
    mean = slab[:B, COL_MEAN:COL_MEAN + LATENT_DIM]
    logvar = slab[:B, COL_LOGVAR:COL_LOGVAR + LATENT_DIM]
    psi_arr = slab[:B, COL_PSI_ARR:COL_PSI_ARR + INPUT_DIM]
    psi_sc = slab[:B, COL_PSI_SC:COL_PSI_SC + 2]
    return x_hat, mean, logvar, psi_arr, psi_sc


def init_params(key):
    """PyTorch nn.Linear default init: U(-1/sqrt(fan_in), 1/sqrt(fan_in))."""
    def linear(key, fan_in, fan_out):
        kw, kb = jax.random.split(key)
        bound = 1.0 / jnp.sqrt(float(fan_in))
        w = jax.random.uniform(kw, (fan_in, fan_out), jnp.float32, -bound, bound)
        b = jax.random.uniform(kb, (1, fan_out), jnp.float32, -bound, bound)
        return w, b

    keys = jax.random.split(key, 8)
    we1, be1 = linear(keys[0], INPUT_DIM, HIDDEN)
    wem, bem = linear(keys[1], HIDDEN, LATENT_DIM)
    wel, bel = linear(keys[2], HIDDEN, LATENT_DIM)
    wd1, bd1 = linear(keys[3], LATENT_DIM, HIDDEN)
    wd2, bd2 = linear(keys[4], HIDDEN, INPUT_DIM)
    wt1, bt1 = linear(keys[5], LATENT_DIM, HIDDEN)
    wt2, bt2 = linear(keys[6], HIDDEN, 2)
    wt3, bt3 = linear(keys[7], HIDDEN, INPUT_DIM)
    return dict(
        we1=we1, be1=be1, wem=wem, bem=bem, wel=wel, bel=bel,
        wd1=wd1, bd1=bd1, wd2=wd2, bd2=bd2,
        wt1=wt1, bt1=bt1, wt2=wt2, bt2=bt2, wt3=wt3, bt3=bt3,
    )


def vae_forward_ref(x, eps, p):
    """Pure-JAX reference for verification (unfused weights)."""
    h = jnp.maximum(x @ p["we1"] + p["be1"], 0.0)
    mean = h @ p["wem"] + p["bem"]
    logvar = h @ p["wel"] + p["bel"]
    z = mean + eps * jnp.exp(0.5 * logvar)
    hd = jnp.maximum(z @ p["wd1"] + p["bd1"], 0.0)
    x_hat = hd @ p["wd2"] + p["bd2"]
    ht = jnp.maximum(z @ p["wt1"] + p["bt1"], 0.0)
    psi_arr = ht @ p["wt3"] + p["bt3"]
    psi_sc = ht @ p["wt2"] + p["bt2"]
    return x_hat, mean, logvar, psi_arr, psi_sc


if __name__ == "__main__":
    key = jax.random.PRNGKey(0)
    k_param, k1, k2, k3, k4, k5, k6 = jax.random.split(key, 7)

    params = init_params(k_param)
    packed = pack_params(params)

    def check(B, kx, ke, tag):
        x = jax.random.normal(kx, (B, INPUT_DIM), jnp.float32)
        # eps corresponds to torch.randn_like(std) in reparameterize(); generated
        # once here so the kernel and the reference use identical noise.
        eps = jax.random.normal(ke, (B, LATENT_DIM), jnp.float32)
        outs = jax.block_until_ready(vae_forward(x, eps, packed))
        refs = vae_forward_ref(x, eps, params)
        for o, r in zip(outs, refs):
            assert o.shape == r.shape and o.dtype == r.dtype, f"shape/dtype mismatch ({tag})"
            assert jnp.allclose(o, r, atol=1e-5, rtol=1e-5), f"mismatch vs reference ({tag})"

    check(8, k1, k2, "B=8 single step")          # tiny batch, grid=(1,)
    check(13, k3, k4, "B=13 padded batch")       # non-multiple-of-8 batch
    check(100, k5, k6, "B=100 multi-step grid")  # >=2 grid steps (v7x path)

    print("KERNEL_OK")
</pallas_src>

<mosaic_0001>
module attributes {stable_mosaic.version = 11 : i64} {
  func.func @vae_kernel(%arg0: i32, %arg1: memref<8x11xf32, #tpu.memory_space<vmem>>, %arg2: memref<8x5xf32, #tpu.memory_space<vmem>>, %arg3: memref<248x128xf32, #tpu.memory_space<vmem>>, %arg4: memref<8x48xf32, #tpu.memory_space<vmem>>) attributes {dimension_semantics = [#tpu.dimension_semantics<parallel>], iteration_bounds = array<i64: 1>, scalar_prefetch = 0 : i64, scratch_operands = 0 : i64, tpu.core_type = #tpu.core_type<tc>, window_params = [{transform_indices = @transform_0, window_bounds = array<i64: 8, 11>}, {transform_indices = @transform_1, window_bounds = array<i64: 8, 5>}, {pipeline_mode = #tpu.pipeline_mode<synchronous>, transform_indices = @transform_2, window_bounds = array<i64: 248, 128>}, {transform_indices = @transform_3, window_bounds = array<i64: 8, 48>}]} {
    %c0 = arith.constant 0 : index
    %c0_0 = arith.constant 0 : index
    %0 = vector.load %arg1[%c0, %c0_0] : memref<8x11xf32, #tpu.memory_space<vmem>>, vector<8x11xf32>
    %c0_1 = arith.constant 0 : index
    %c0_2 = arith.constant 0 : index
    %1 = vector.load %arg2[%c0_1, %c0_2] : memref<8x5xf32, #tpu.memory_space<vmem>>, vector<8x5xf32>
    %cst = arith.constant 0.000000e+00 : f32
    %2 = vector.broadcast %cst : f32 to vector<8x5xf32>
    %3 = tpu.concatenate %0, %2 in 1 : vector<8x11xf32>, vector<8x5xf32> -> vector<8x16xf32>
    %cst_3 = arith.constant 0.000000e+00 : f32
    %4 = vector.broadcast %cst_3 : f32 to vector<8x3xf32>
    %5 = tpu.concatenate %1, %4 in 1 : vector<8x5xf32>, vector<8x3xf32> -> vector<8x8xf32>
    %c0_4 = arith.constant 0 : index
    %c0_5 = arith.constant 0 : index
    %6 = vector.load %arg3[%c0_4, %c0_5] : memref<248x128xf32, #tpu.memory_space<vmem>>, vector<16x64xf32>
    %c16 = arith.constant 16 : index
    %c0_6 = arith.constant 0 : index
    %7 = vector.load %arg3[%c16, %c0_6] : memref<248x128xf32, #tpu.memory_space<vmem>>, vector<1x64xf32>
    %c24 = arith.constant 24 : index
    %c0_7 = arith.constant 0 : index
    %8 = vector.load %arg3[%c24, %c0_7] : memref<248x128xf32, #tpu.memory_space<vmem>>, vector<64x16xf32>
    %c88 = arith.constant 88 : index
    %c0_8 = arith.constant 0 : index
    %9 = vector.load %arg3[%c88, %c0_8] : memref<248x128xf32, #tpu.memory_space<vmem>>, vector<1x16xf32>
    %c96 = arith.constant 96 : index
    %c0_9 = arith.constant 0 : index
    %10 = vector.load %arg3[%c96, %c0_9] : memref<248x128xf32, #tpu.memory_space<vmem>>, vector<8x128xf32>
    %c104 = arith.constant 104 : index
    %c0_10 = arith.constant 0 : index
    %11 = vector.load %arg3[%c104, %c0_10] : memref<248x128xf32, #tpu.memory_space<vmem>>, vector<1x128xf32>
    %c112 = arith.constant 112 : index
    %c0_11 = arith.constant 0 : index
    %12 = vector.load %arg3[%c112, %c0_11] : memref<248x128xf32, #tpu.memory_space<vmem>>, vector<128x32xf32>
    %c240 = arith.constant 240 : index
    %c0_12 = arith.constant 0 : index
    %13 = vector.load %arg3[%c240, %c0_12] : memref<248x128xf32, #tpu.memory_space<vmem>>, vector<1x32xf32>
    %cst_13 = arith.constant dense<0.000000e+00> : vector<8x64xf32>
    %14 = tpu.matmul %3, %6, %cst_13 {dimension_numbers = #tpu.dot_dimension_numbers<[1], [0], [0], [1], [0, 0, 1, 1], [], []>} : vector<8x16xf32>, vector<16x64xf32>, vector<8x64xf32> -> vector<8x64xf32>
    %15 = vector.broadcast %7 : vector<1x64xf32> to vector<8x64xf32>
    %16 = arith.addf %14, %15 : vector<8x64xf32>
    %cst_14 = arith.constant 0.000000e+00 : f32
    %17 = vector.broadcast %cst_14 : f32 to vector<8x64xf32>
    %18 = arith.maximumf %16, %17 : vector<8x64xf32>
    %cst_15 = arith.constant dense<0.000000e+00> : vector<8x16xf32>
    %19 = tpu.matmul %18, %8, %cst_15 {dimension_numbers = #tpu.dot_dimension_numbers<[1], [0], [0], [1], [0, 0, 1, 1], [], []>} : vector<8x64xf32>, vector<64x16xf32>, vector<8x16xf32> -> vector<8x16xf32>
    %20 = vector.broadcast %9 : vector<1x16xf32> to vector<8x16xf32>
    %21 = arith.addf %19, %20 : vector<8x16xf32>
    %22 = vector.extract_strided_slice %21 {offsets = [0, 0], sizes = [8, 8], strides = [1, 1]} : vector<8x16xf32> to vector<8x8xf32>
    %23 = vector.extract_strided_slice %21 {offsets = [0, 8], sizes = [8, 8], strides = [1, 1]} : vector<8x16xf32> to vector<8x8xf32>
    %cst_16 = arith.constant 5.000000e-01 : f32
    %24 = vector.broadcast %cst_16 : f32 to vector<8x8xf32>
    %25 = arith.mulf %24, %23 : vector<8x8xf32>
    %26 = math.exp %25 : vector<8x8xf32>
    %27 = arith.mulf %5, %26 : vector<8x8xf32>
    %28 = arith.addf %22, %27 : vector<8x8xf32>
    %cst_17 = arith.constant dense<0.000000e+00> : vector<8x128xf32>
    %29 = tpu.matmul %28, %10, %cst_17 {dimension_numbers = #tpu.dot_dimension_numbers<[1], [0], [0], [1], [0, 0, 1, 1], [], []>} : vector<8x8xf32>, vector<8x128xf32>, vector<8x128xf32> -> vector<8x128xf32>
    %30 = vector.broadcast %11 : vector<1x128xf32> to vector<8x128xf32>
    %31 = arith.addf %29, %30 : vector<8x128xf32>
    %cst_18 = arith.constant 0.000000e+00 : f32
    %32 = vector.broadcast %cst_18 : f32 to vector<8x128xf32>
    %33 = arith.maximumf %31, %32 : vector<8x128xf32>
    %cst_19 = arith.constant dense<0.000000e+00> : vector<8x32xf32>
    %34 = tpu.matmul %33, %12, %cst_19 {dimension_numbers = #tpu.dot_dimension_numbers<[1], [0], [0], [1], [0, 0, 1, 1], [], []>} : vector<8x128xf32>, vector<128x32xf32>, vector<8x32xf32> -> vector<8x32xf32>
    %35 = vector.broadcast %13 : vector<1x32xf32> to vector<8x32xf32>
    %36 = arith.addf %34, %35 : vector<8x32xf32>
    %c0_20 = arith.constant 0 : index
    %c0_21 = arith.constant 0 : index
    %37 = vector.load %arg4[%c0_20, %c0_21] : memref<8x48xf32, #tpu.memory_space<vmem>>, vector<8x32xf32>
    tpu.vector_store %arg4[%c0_20, %c0_21], %36 {strides = array<i32>} : memref<8x48xf32, #tpu.memory_space<vmem>>, vector<8x32xf32>,
    %c0_22 = arith.constant 0 : index
    %c32 = arith.constant 32 : index
    %38 = vector.load %arg4[%c0_22, %c32] : memref<8x48xf32, #tpu.memory_space<vmem>>, vector<8x16xf32>
    tpu.vector_store %arg4[%c0_22, %c32], %21 {strides = array<i32>} : memref<8x48xf32, #tpu.memory_space<vmem>>, vector<8x16xf32>,
    return
  }
  func.func @transform_0(%arg0: i32) -> (i32, i32) {
    %c0_i32 = arith.constant 0 : i32
    %c0_i32_0 = arith.constant 0 : i32
    return %arg0, %c0_i32 : i32, i32
  }
  func.func @transform_1(%arg0: i32) -> (i32, i32) {
    %c0_i32 = arith.constant 0 : i32
    %c0_i32_0 = arith.constant 0 : i32
    return %arg0, %c0_i32 : i32, i32
  }
  func.func @transform_2(%arg0: i32) -> (i32, i32) {
    %c0_i32 = arith.constant 0 : i32
    %c0_i32_0 = arith.constant 0 : i32
    %c0_i32_1 = arith.constant 0 : i32
    return %c0_i32, %c0_i32_0 : i32, i32
  }
  func.func @transform_3(%arg0: i32) -> (i32, i32) {
    %c0_i32 = arith.constant 0 : i32
    %c0_i32_0 = arith.constant 0 : i32
    return %arg0, %c0_i32 : i32, i32
  }
}

</mosaic_0001>

<bundles_post_ra>
// kernel: tpu_custom_call.1
= control target key start
LH: loop header
LB: loop body
LE: loop exit
PB: predicated region body
PF: predicated region fallthrough
CT: control target
= control target key end

     0   :  { %8 = vsyncpa [#allocation3], 0  ;;  %s778_s0 = inlined_call_operand.hbm [shape: f32[8,11], index: 0, kind: input, shape index: {}]   ;;  %s779_s1 = inlined_call_operand.hbm [shape: f32[8,5], index: 1, kind: input, shape index: {}]   ;;  %s780_s2 = inlined_call_operand.hbm [shape: f32[248,128], index: 2, kind: input, shape index: {}]   ;;  %s781_s3 = inlined_call_operand.hbm [shape: f32[8,48], index: 3, kind: output, shape index: {}]  }
   0x1   :  { %9 = vsyncpa [#allocation6], 0 }
   0x2   :  { %10 = vsyncpa [#allocation4], 0  ;;  %s682_s12 = smov [#allocation5]   ;;  %s683_s14 = smov [#allocation2]  }
   0x3   :  { %s27_s13 = sshll.u32 %s682_s12, 4  ;;  %s17_s15 = sshll.u32 %s683_s14, 4  ;;  %s28_s13 = int_to_ptr.vmem [resolvable:$true] %s27_s13  ;;  %s18_s15 = int_to_ptr.vmem [resolvable:$true] %s17_s15 }
   0x4   :  { %s588_s18 = scalar_lea.hbm %s779_s1, 128 }
   0x5   :  { %p589_p0 = scmp.ne.s32.totalorder %s779_s1, %s588_s18  ;;  %p592_p1 = scmp.lt.u32.totalorder %s588_s18, %s779_s1 }
   0x7   :  { %p594_p2 = pnand %p592_p1, %p589_p0 }
   0x9   :  { %597 = shalt.err (!%p594_p2)
}
   0xa   :  { %s598_s23 = scalar_lea.vmem %s28_s13, 128  ;;  %p603_p4 = scmp.lt.s32.totalorder %s28_s13, %s28_s13 }
   0xb   :  { %p599_p3 = scmp.ne.s32.totalorder %s28_s13, %s598_s23  ;;  %p604_p5 = scmp.lt.s32.totalorder %s598_s23, %s598_s23 }
   0xd   :  { %p605_p6 = por %p604_p5, %p603_p4 }
   0xf   :  { %p606_p7 = pnand %p605_p6, %p599_p3 }
  0x11   :  { %609 = shalt.err (!%p606_p7)
}
  0x12   :  { %30 = dma.hbm_to_vmem [thread:$0]  %s779_s1, 128, %s28_s13, [#allocation6]  }
  0x13   :  { %s610_s28 = scalar_lea.hbm %s778_s0, 128 }
  0x14   :  { %p611_p8 = scmp.ne.s32.totalorder %s778_s0, %s610_s28  ;;  %p614_p9 = scmp.lt.u32.totalorder %s610_s28, %s778_s0 }
  0x16   :  { %p616_p10 = pnand %p614_p9, %p611_p8 }
  0x18   :  { %619 = shalt.err (!%p616_p10)
}
  0x19   :  { %s620_s6 = scalar_lea.vmem %s18_s15, 128  ;;  %p625_p12 = scmp.lt.s32.totalorder %s18_s15, %s18_s15 }
  0x1a   :  { %p621_p11 = scmp.ne.s32.totalorder %s18_s15, %s620_s6  ;;  %p626_p13 = scmp.lt.s32.totalorder %s620_s6, %s620_s6 }
  0x1c   :  { %p627_p0 = por %p626_p13, %p625_p12 }
  0x1e   :  { %p628_p1 = pnand %p627_p0, %p621_p11 }
  0x20   :  { %631 = shalt.err (!%p628_p1)
}
  0x21   :  { %20 = dma.hbm_to_vmem [thread:$0]  %s778_s0, 128, %s18_s15, [#allocation3]  }
  0x22   :  { %s684_s8 = smov [#allocation7]   ;;  %s632_s12 = scalar_lea.hbm %s780_s2, 3968 }
  0x23   :  { %s36_s9 = sshll.u32 %s684_s8, 4  ;;  %p633_p2 = scmp.ne.s32.totalorder %s780_s2, %s632_s12  ;;  %s37_s9 = int_to_ptr.vmem [resolvable:$true] %s36_s9 }
  0x24   :  { %p636_p3 = scmp.lt.u32.totalorder %s632_s12, %s780_s2 }
  0x26   :  { %p638_p4 = pnand %p636_p3, %p633_p2 }
  0x28   :  { %641 = shalt.err (!%p638_p4)
}
  0x29   :  { %s642_s18 = scalar_lea.vmem %s37_s9, 3968  ;;  %p647_p6 = scmp.lt.s32.totalorder %s37_s9, %s37_s9 }
  0x2a   :  { %p643_p5 = scmp.ne.s32.totalorder %s37_s9, %s642_s18  ;;  %p648_p7 = scmp.lt.s32.totalorder %s642_s18, %s642_s18 }
  0x2c   :  { %p649_p8 = por %p648_p7, %p647_p6 }
  0x2e   :  { %p650_p9 = pnand %p649_p8, %p643_p5 }
  0x30   :  { %653 = shalt.err (!%p650_p9)
}
  0x31   :  { %s685_s0 = smov 128   ;;  %s686_s15 = smov 8  }
  0x32   :  { %42 = dma.hbm_to_vmem [thread:$0]  %s780_s2, 3968, %s37_s9, [#allocation6], %s685_s0, %s685_s0, %s686_s15  }
  0x33   :  { %676 = dma.done.wait [#allocation3], 128  }
  0x34   :  { %677 = vsyncadd [#allocation3], 4294967168 }
  0x35   :  { %678 = dma.done.wait [#allocation6], 4096  }
  0x36   :  { %679 = vsyncadd [#allocation6], 4294963200  ;;  %v687_v0 = vmov 0.0|0.0   ;;  %vm688_vm0 = vmmov 0   ;;  %v689_v1 = vmov 0.0   ;;  %v58_v2 = vld [vmem:[#allocation7] sm:$0xff] }
  0x37   :  { %536 = vmatprep.subr.bf16.mxu1 %v687_v0  ;;  %474 = vmatprep.mubr.msk.f32.mxu1 %vm688_vm0, %v689_v1  ;;  %v59_v3 = vld [vmem:[#allocation7 + $0x8] sm:$0xff]  ;;  %v52_v4 = vld [vmem:[#allocation2] sm:$0xff]  ;;  %vm54_vm1 = vcmask 89088   ;;  %v61_v6 = vld [vmem:[#allocation7 + $0x18] sm:$0xff]  ;;  %vm93_vm2 = vcmask 130048   ;;  %vm172_vm3 = vcmask 523264  }
  0x38   :  { %551 = vmatprep.subr.bf16.mxu0 %v687_v0  ;;  %533 = vmatprep.mubr.msk.f32.mxu0 %vm688_vm0, %v689_v1  ;;  %v537_v5 = vpack.c.bf16 %v59_v3, %v58_v2  ;;  %v62_v7 = vld [vmem:[#allocation7 + $0x20] sm:$0xff]  ;;  %v55_v8 = vsel %vm54_vm1, %v52_v4, 0.0  ;;  %v63_v10 = vld [vmem:[#allocation7 + $0x28] sm:$0xff]  ;;  %v64_v11 = vld [vmem:[#allocation7 + $0x30] sm:$0xff]  ;;  %s690_s2 = smov 120   ;;  %s691_s21 = smov 32  }
  0x39   :  { %v540_v9 = vpack.c.bf16 %v62_v7, %v61_v6  ;;  %v543_v12 = vpack.c.bf16 %v64_v11, %v63_v10  ;;  %v65_v13 = vld [vmem:[#allocation7 + $0x38] sm:$0xff]  ;;  %v66_v14 = vld [vmem:[#allocation7 + $0x40] sm:$0xff]  ;;  %v67_v16 = vld [vmem:[#allocation7 + $0x48] sm:$0xff]  ;;  %vm56_vm4 = vcmask 39936   ;;  %vm259_vm5 = vcmask 64512   ;;  %s692_s22 = smov [#allocation8]  }
  0x3a   :  { %538 = vmatpush3.bf16.msra.mxu1 %v537_v5  ;;  %v546_v15 = vpack.c.bf16 %v66_v14, %v65_v13  ;;  %v68_v17 = vld [vmem:[#allocation7 + $0x50] sm:$0xff]  ;;  %v434_v24 = vld [vmem:[#allocation7 + $0x58] ss:$0 sm:$0xff]  ;;  %v70_v30 = vld [vmem:[#allocation7 + $0x60] sm:$0xff]  ;;  %s422_s23 = sshll.u32 %s692_s22, 4  ;;  %vm408_vm6 = vcmask 261120   ;;  %s423_s23 = int_to_ptr.vmem [resolvable:$true] %s422_s23 }
  0x3b   :  { %539 = vmatprep.subr.bf16.mxu1 %v687_v0  ;;  %v549_v18 = vpack.c.bf16 %v68_v17, %v67_v16  ;;  %v432_v19 = vld [vmem:[#allocation7 + $0x10] ss:$0 sm:$0xff]  ;;  %v73_v32 = vld [vmem:[#allocation7 + $0x78] sm:$0xff]  ;;  %v74_v33 = vld [vmem:[#allocation7 + $0x80] sm:$0xff]  ;;  %vm414_vm7 = vcmask 392448   ;;  %s654_s24 = scalar_lea.vmem %s423_s23, 128  ;;  %p659_p11 = scmp.lt.s32.totalorder %s423_s23, %s423_s23 }
  0x3c   :  { %v72_v31 = vld [vmem:[#allocation7 + $0x70] sm:$0xff]  ;;  %v75_v35 = vld [vmem:[#allocation7 + $0x88] sm:$0xff]  ;;  %v77_v38 = vld [vmem:[#allocation7 + $0x98] sm:$0xff]  ;;  %p655_p10 = scmp.ne.s32.totalorder %s423_s23, %s654_s24  ;;  %p660_p12 = scmp.lt.s32.totalorder %s654_s24, %s654_s24 }
  0x3d   :  { %475 = vmatmul.mubr.msk.f32.vlgmr.msra.gmra.mrb[0].mxu1 %vm93_vm2, %v55_v8  ;;  %v552_v34 = vpack.c.bf16 %v73_v32, %v72_v31  ;;  %v555_v36 = vpack.c.bf16 %v75_v35, %v74_v33  ;;  %v76_v37 = vld [vmem:[#allocation7 + $0x90] sm:$0xff]  ;;  %v78_v41 = vld [vmem:[#allocation7 + $0xa0] sm:$0xff]  ;;  %v79_v42 = vld [vmem:[#allocation7 + $0xa8] sm:$0xff] }
  0x3e   :  { %541 = vmatpush3.bf16.msra.mxu1 %v540_v9  ;;  %493 = vmatprep.mubr.msk.f32.mxu1 %vm688_vm0, %v689_v1  ;;  %v558_v39 = vpack.c.bf16 %v77_v38, %v76_v37  ;;  %v561_v43 = vpack.c.bf16 %v79_v42, %v78_v41  ;;  %v80_v44 = vld [vmem:[#allocation7 + $0xb0] sm:$0xff]  ;;  %v81_v45 = vld [vmem:[#allocation7 + $0xb8] sm:$0xff]  ;;  %v82_v47 = vld [vmem:[#allocation7 + $0xc0] sm:$0xff]  ;;  %p661_p13 = por %p660_p12, %p659_p11 }
  0x3f   :  { %542 = vmatprep.subr.bf16.mxu1 %v687_v0  ;;  %553 = vmatpush3.bf16.msra.mxu0 %v552_v34  ;;  %v564_v46 = vpack.c.bf16 %v81_v45, %v80_v44  ;;  %v83_v48 = vld [vmem:[#allocation7 + $0xc8] sm:$0xff]  ;;  %v84_v50 = vld [vmem:[#allocation7 + $0xd0] sm:$0xff]  ;;  %v85_v51 = vld [vmem:[#allocation7 + $0xd8] sm:$0xff] }
  0x40   :  { %554 = vmatprep.subr.bf16.mxu0 %v687_v0  ;;  %v567_v49 = vpack.c.bf16 %v83_v48, %v82_v47  ;;  %v570_v52 = vpack.c.bf16 %v85_v51, %v84_v50  ;;  %v53_v53 = vld [vmem:[#allocation5] sm:$0xff]  ;;  %v86_v58 = vld [vmem:[#allocation7 + $0xe0] sm:$0xff]  ;;  %v87_v59 = vld [vmem:[#allocation7 + $0xe8] sm:$0xff]  ;;  %p662_p0 = pnand %p661_p13, %p655_p10 }
  0x41   :  { %v57_v54 = vsel %vm56_vm4, %v53_v53, 0.0  ;;  %v573_v60 = vpack.c.bf16 %v87_v59, %v86_v58  ;;  %v436_v61 = vld [vmem:[#allocation7 + $0x68] ss:$0 sm:$0xff]  ;;  %v438_v3 = vld [vmem:[#allocation7 + $0xf0] ss:$0 sm:$0xff] }
  0x42   :  { %544 = vmatpush3.bf16.msra.mxu1 %v543_v12 }
  0x43   :  { %545 = vmatprep.subr.bf16.mxu1 %v687_v0  ;;  %556 = vmatpush3.bf16.msra.mxu0 %v555_v36 }
  0x44   :  { %557 = vmatprep.subr.bf16.mxu0 %v687_v0 }
  0x46   :  { %547 = vmatpush3.bf16.msra.mxu1 %v546_v15 }
  0x47   :  { %548 = vmatprep.subr.bf16.mxu1 %v687_v0  ;;  %559 = vmatpush3.bf16.msra.mxu0 %v558_v39 }
  0x48   :  { %560 = vmatprep.subr.bf16.mxu0 %v687_v0 }
  0x4a   :  { %550 = vmatpush3.bf16.msra.mxu1 %v549_v18 }
  0x4b   :  { %496 = vmatprep.subr.mxu1 %v689_v1  ;;  %562 = vmatpush3.bf16.msra.mxu0 %v561_v43 }
  0x4c   :  { %563 = vmatprep.subr.bf16.mxu0 %v687_v0 }
  0x4f   :  { %565 = vmatpush3.bf16.msra.mxu0 %v564_v46 }
  0x50   :  { %566 = vmatprep.subr.bf16.mxu0 %v687_v0 }
  0x53   :  { %568 = vmatpush3.bf16.msra.mxu0 %v567_v49 }
  0x54   :  { %569 = vmatprep.subr.bf16.mxu0 %v687_v0 }
  0x57   :  { %571 = vmatpush3.bf16.msra.mxu0 %v570_v52 }
  0x58   :  { %572 = vmatprep.subr.bf16.mxu0 %v687_v0 }
  0x5b   :  { %574 = vmatpush3.bf16.msra.mxu0 %v573_v60 }
 0x110   :  { %v163_v20 = vpop.f32.mrb[0].mxu1 }
 0x111   :  { %v164_v21 = vadd.f32 %v432_v19, %v163_v20  ;;  %v476_v22 = vpop.f32.mrb[1].mxu1 }
 0x113   :  { %v167_v23 = vmax.f32 %v164_v21, 0.0 }
 0x115   :  { %494 = vmatmul.mubr.msk.f32.vlgmr.msra.gmra.mrb[2].mxu1 %vm172_vm3, %v167_v23 }
 0x116   :  { %498 = vmatprep.mubr.msk.f32.mxu1 %vm688_vm0, %v689_v1  ;;  %497 = vmatpush3.msra.mxu1 %v70_v30 }
 0x1e8   :  { %v242_v25 = vpop.f32.mrb[2].mxu1 }
 0x1e9   :  { %v243_v26 = vadd.f32 %v434_v24, %v242_v25  ;;  %v495_v27 = vpop.f32.mrb[3].mxu1 }
 0x1eb   :  { %v246_v28 = vmul.f32 0.5, %v243_v26 }
 0x1ed   :  { %v247_v29 = vmul.f32 1.442695, %v246_v28 }
 0x1ef   :  { %586 = vpow2.f32 %v247_v29 }
 0x1f9   :  { %v587_v40 = vpop.eup %586 }
 0x1fa   :  { %250 = vrot.lane.b32.xlu0 %v587_v40, %s690_s2 }
 0x1fe   :  { %411 = vrot.lane.b32.xlu0 %v243_v26, %s691_s21 }
 0x26c   :  { %v251_v55 = vpop.permute.xlu0 %250 }
 0x26d   :  { %v253_v56 = vmul.f32 %v251_v55, %v57_v54 }
 0x26f   :  { %v254_v57 = vadd.f32 %v253_v56, %v243_v26 }
 0x270   :  { %v412_v6 = vpop.permute.xlu0 %411 }
 0x271   :  { %499 = vmatmul.mubr.msk.f32.vlgmr.msra.gmra.mrb[4].mxu1 %vm259_vm5, %v254_v57 }
 0x344   :  { %v329_v62 = vpop.f32.mrb[4].mxu1 }
 0x345   :  { %v330_v63 = vadd.f32 %v436_v61, %v329_v62  ;;  %v500_v1 = vpop.f32.mrb[5].mxu1 }
 0x347   :  { %v333_v2 = vmax.f32 %v330_v63, 0.0 }
 0x349   :  { %534 = vmatmul.mubr.f32.vlgmr.msra.gmra.mrb[0].mxu0 %v333_v2 }
 0x41c   :  { %v404_v0 = vpop.f32.mrb[0].mxu0 }
 0x41d   :  { %v405_v4 = vadd.f32 %v438_v3, %v404_v0  ;;  %v535_v5 = vpop.f32.mrb[1].mxu0 }
 0x41f   :  { %409 = vst.msk [vmem:[#allocation8] sm:$0xff] %vm408_vm6, %v405_v4 }
 0x420   :  { %415 = vst.msk [vmem:[#allocation8] sm:$0xff] %vm414_vm7, %v412_v6 }
 0x421   :  { %665 = shalt.err (!%p662_p0)
}
 0x422   :  { %s666_s27 = scalar_lea.hbm %s781_s3, 128 }
 0x423   :  { %p667_p1 = scmp.ne.s32.totalorder %s781_s3, %s666_s27  ;;  %p670_p2 = scmp.lt.u32.totalorder %s666_s27, %s781_s3 }
 0x425   :  { %p672_p3 = pnand %p670_p2, %p667_p1 }
 0x427   :  { %675 = shalt.err (!%p672_p3)
}
 0x428   :  { %425 = dma.vmem_to_hbm [thread:$0]  %s423_s23, 128, %s781_s3, [#allocation4]  }
 0x429   :  { %680 = dma.done.wait [#allocation4], 128  }
 0x42a   :  { %681 = vsyncadd [#allocation4], 4294967168 }
 0x42b   :  { %429 = vsyncpa [#allocation3], 1 }
 0x42c   :  { %430 = vsyncpa [#allocation6], 1 }
 0x42d   :  { %431 = vsyncpa [#allocation4], 1 }

</bundles_post_ra>
